<compile_context>
chip_gen: v6e
topology: v6e:2x2x1
jax: 0.10.0
libtpu: 0.0.40
codegen_flags: <defaults>
</compile_context>

<pallas_src>
import math

import jax
import jax.numpy as jnp
from jax import lax
from jax.experimental import pallas as pl
from jax.experimental.pallas import tpu as pltpu


_RING = 8  # in-flight row DMAs (depth of the DMA-semaphore ring)


def _scatter_dma_kernel(idx_ref, src_ref, inp_ref, val_ref, out_ref, sems):
    # idx_ref : SMEM int32[N] destination row of entry r (negatives pre-wrapped)
    # src_ref : SMEM int32[N] value row supplying entry r (deduped: last occurrence)
    # inp_ref : HBM ref of the donated input; never read -- aliasing alone keeps
    #           the rows that are not scattered intact
    # val_ref : HBM ref (N, ROW) of value rows (DMA source)
    # out_ref : HBM ref (D0, ROW) output == aliased input buffer (DMA destination)
    # sems    : DMA semaphore ring (_RING,)
    del inp_ref
    n = idx_ref.shape[0]  # static scatter count

    def _copy(r, slot):
        return pltpu.make_async_copy(
            val_ref.at[src_ref[r]], out_ref.at[idx_ref[r]], sems.at[slot])

    def _issue(r, carry):
        slot = r % _RING

        @pl.when(r >= _RING)
        def _():
            # Retire the copy that last used this slot before reusing it.
            # (wait only needs matching shape + semaphore, not the same view)
            _copy(r, slot).wait()

        _copy(r, slot).start()
        return carry

    lax.fori_loop(0, n, _issue, 0)

    # Drain the (up to _RING) still-outstanding copies before the kernel ends.
    def _drain(r, carry):
        _copy(r, r % _RING).wait()
        return carry

    lax.fori_loop(max(n - _RING, 0), n, _drain, 0)


def _scatter_rows(inp, index, value):
    """out = inp with out[index[i], ...] = value[i, ...]; last write wins."""
    D0 = inp.shape[0]
    N = value.shape[0]
    row = math.prod(inp.shape[1:])

    # Flatten trailing dims: each scattered row becomes one contiguous,
    # lane-dense DMA descriptor (free metadata-only reshape).
    inp2 = inp.reshape(D0, row)
    val2 = value.reshape(N, row)

    idx = index.astype(jnp.int32)
    idx = jnp.where(idx < 0, idx + D0, idx)  # PyTorch-style negative wrap

    # Last-write-wins made order-independent: every entry targeting dest d
    # sources from the LAST entry targeting d, so racing in-flight DMAs to the
    # same row write identical bytes.  (Small O(N^2) bool matrix on XLA side.)
    ar = jnp.arange(N, dtype=jnp.int32)
    same = idx[:, None] == idx[None, :]
    src = jnp.max(jnp.where(same, ar[None, :], jnp.int32(-1)), axis=1)

    out2 = pl.pallas_call(
        _scatter_dma_kernel,
        out_shape=jax.ShapeDtypeStruct((D0, row), inp2.dtype),
        grid_spec=pltpu.PrefetchScalarGridSpec(
            num_scalar_prefetch=2,        # idx + src land in SMEM
            grid=(1,),                    # all rows scattered in one step
            in_specs=[
                pl.BlockSpec(memory_space=pl.ANY),   # donated input (HBM, never read)
                pl.BlockSpec(memory_space=pl.ANY),   # value rows (HBM, DMA source)
            ],
            out_specs=pl.BlockSpec(memory_space=pl.ANY),  # output (HBM, DMA dest)
            scratch_shapes=[pltpu.SemaphoreType.DMA((_RING,))],
        ),
        # inputs: 0=idx, 1=src (scalar prefetch), 2=inp2, 3=val2
        input_output_aliases={2: 0},
        compiler_params=pltpu.CompilerParams(
            dimension_semantics=("arbitrary",),
        ),
    )(idx, src, inp2, val2)
    return out2.reshape(inp.shape)


def index_put_3d(inp, index, value):
    """Non-accumulating index_put along dim 0 of a 3-D tensor (last write wins)."""
    D0, D1, D2 = inp.shape
    N = index.shape[0]
    if N == 0:                        # static shape check: nothing to scatter
        return inp

    dtype = inp.dtype
    if jnp.dtype(dtype).itemsize == 8:
        # torch spec uses int64 elements; the kernel is a pure memcpy, so view
        # each 64-bit element as two 32-bit words and scatter those.
        # TODO(synk): only exercised when jax_enable_x64 is on; default test uses int32.
        inp32 = lax.bitcast_convert_type(inp, jnp.uint32).reshape(D0, D1, 2 * D2)
        val32 = lax.bitcast_convert_type(value, jnp.uint32).reshape(N, D1, 2 * D2)
        out32 = _scatter_rows(inp32, index, val32)
        return lax.bitcast_convert_type(out32.reshape(D0, D1, D2, 2), dtype)
    return _scatter_rows(inp, index, value)


if __name__ == "__main__":
    import numpy as np

    key = jax.random.PRNGKey(0)

    # Donate `input` so XLA can elide the defensive clone in front of the
    # aliased pallas_call (otherwise the whole point of input_output_aliases
    # is lost to a full D0 x D1 x D2 copy).
    put = jax.jit(index_put_3d, donate_argnums=0)

    def reference(inp, index, value):
        ref = np.array(inp)
        idx = np.array(index)
        val = np.array(value)
        for i in range(idx.shape[0]):
            ref[idx[i]] = val[i]          # numpy wraps negatives like torch
        return ref

    # TODO(synk): torch spec uses int64 elements/indices; runnable test uses
    # int32 (TPU has no native 64-bit vector path and x64 is off by default).
    # The wrapper's bitcast path restores exact 64-bit semantics under x64.

    # --- Test 1: duplicates 1/2/4 steps apart + a negative index -------------
    D0, D1, D2, N = 16, 8, 128, 7
    k1, k2 = jax.random.split(key)
    inp = jax.random.randint(k1, (D0, D1, D2), -100, 100, dtype=jnp.int32)
    value = jax.random.randint(k2, (N, D1, D2), -100, 100, dtype=jnp.int32)
    index = jnp.array([3, -1, 3, 7, 0, 7, 3], dtype=jnp.int32)
    ref = reference(inp, index, value)
    out = jax.block_until_ready(put(inp, index, value))
    assert out.shape == (D0, D1, D2) and out.dtype == jnp.int32
    assert np.array_equal(np.asarray(out), ref), "test 1: index_put mismatch"

    # --- Test 2: stress the DMA ring + dedupe with many duplicate-heavy rows -
    D0, D1, D2, N = 32, 4, 64, 75
    k1, k2, k3 = jax.random.split(key, 3)
    inp = jax.random.randint(k1, (D0, D1, D2), -1000, 1000, dtype=jnp.int32)
    value = jax.random.randint(k2, (N, D1, D2), -1000, 1000, dtype=jnp.int32)
    index = jax.random.randint(k3, (N,), -D0, D0, dtype=jnp.int32)
    ref = reference(inp, index, value)
    out = jax.block_until_ready(put(inp, index, value))
    assert np.array_equal(np.asarray(out), ref), "test 2: index_put mismatch"

    print("KERNEL_OK")
</pallas_src>

<mosaic_0001>
module attributes {stable_mosaic.version = 11 : i64} {
  func.func @_scatter_dma_kernel(%arg0: i32, %arg1: memref<7xi32, #tpu.memory_space<smem>>, %arg2: memref<7xi32, #tpu.memory_space<smem>>, %arg3: memref<16x1024xi32, #tpu.memory_space<any>>, %arg4: memref<7x1024xi32, #tpu.memory_space<any>>, %arg5: memref<16x1024xi32, #tpu.memory_space<any>>, %arg6: memref<8x!tpu.dma_semaphore, #tpu.memory_space<semaphore_mem>>) attributes {dimension_semantics = [#tpu.dimension_semantics<arbitrary>], iteration_bounds = array<i64: 1>, scalar_prefetch = 2 : i64, scratch_operands = 1 : i64, tpu.core_type = #tpu.core_type<tc>, window_params = [{}, {}, {}]} {
    %c0_i32 = arith.constant 0 : i32
    %c7_i32 = arith.constant 7 : i32
    %0 = arith.addi %c0_i32, %c7_i32 : i32
    %c1_i32 = arith.constant 1 : i32
    scf.for %arg7 = %c0_i32 to %0 step %c1_i32  : i32 {
      %c8_i32 = arith.constant 8 : i32
      %c0_i32_5 = arith.constant 0 : i32
      %2 = arith.cmpi eq, %c8_i32, %c0_i32_5 : i32
      %c1_i32_6 = arith.constant 1 : i32
      %3 = arith.select %2, %c1_i32_6, %c8_i32 : i32
      %4 = arith.remsi %arg7, %3 : i32
      %c0_i32_7 = arith.constant 0 : i32
      %5 = arith.cmpi ne, %4, %c0_i32_7 : i32
      %c0_i32_8 = arith.constant 0 : i32
      %6 = arith.cmpi slt, %4, %c0_i32_8 : i32
      %c0_i32_9 = arith.constant 0 : i32
      %7 = arith.cmpi slt, %3, %c0_i32_9 : i32
      %8 = arith.xori %6, %7 : i1
      %9 = arith.andi %8, %5 : i1
      %10 = arith.addi %4, %3 : i32
      %11 = arith.select %9, %10, %4 : i32
      %c8_i32_10 = arith.constant 8 : i32
      %12 = arith.cmpi sge, %arg7, %c8_i32_10 : i32
      %13 = arith.extui %12 : i1 to i32
      %c0_i32_11 = arith.constant 0 : i32
      %14 = arith.cmpi ne, %13, %c0_i32_11 : i32
      scf.if %14 {
        %25 = arith.index_cast %arg7 : i32 to index
        %26 = memref.load %arg2[%25] : memref<7xi32, #tpu.memory_space<smem>>
        %27 = arith.index_cast %arg7 : i32 to index
        %28 = memref.load %arg1[%27] : memref<7xi32, #tpu.memory_space<smem>>
        %c0_i32_14 = arith.constant 0 : i32
        %29 = tpu.memref_slice %arg4[%26, %c0_i32_14] : memref<7x1024xi32, #tpu.memory_space<any>> -> memref<1x1024xi32, #tpu.memory_space<any>>
        %30 = tpu.memref_squeeze %29 : memref<1x1024xi32, #tpu.memory_space<any>> -> memref<1024xi32, #tpu.memory_space<any>>
        %c0_i32_15 = arith.constant 0 : i32
        %31 = tpu.memref_slice %arg5[%28, %c0_i32_15] : memref<16x1024xi32, #tpu.memory_space<any>> -> memref<1x1024xi32, #tpu.memory_space<any>>
        %32 = tpu.memref_squeeze %31 : memref<1x1024xi32, #tpu.memory_space<any>> -> memref<1024xi32, #tpu.memory_space<any>>
        %33 = tpu.memref_slice %arg6[%11] : memref<8x!tpu.dma_semaphore, #tpu.memory_space<semaphore_mem>> -> memref<1x!tpu.dma_semaphore, #tpu.memory_space<semaphore_mem>>
        %34 = tpu.memref_squeeze %33 : memref<1x!tpu.dma_semaphore, #tpu.memory_space<semaphore_mem>> -> memref<!tpu.dma_semaphore, #tpu.memory_space<semaphore_mem>>
        tpu.wait_dma2 semaphore(%34 : memref<!tpu.dma_semaphore, #tpu.memory_space<semaphore_mem>>) src(%30 : memref<1024xi32, #tpu.memory_space<any>>) dst(%32 : memref<1024xi32, #tpu.memory_space<any>>)
      } else {
      }
      %15 = arith.index_cast %arg7 : i32 to index
      %16 = memref.load %arg2[%15] : memref<7xi32, #tpu.memory_space<smem>>
      %17 = arith.index_cast %arg7 : i32 to index
      %18 = memref.load %arg1[%17] : memref<7xi32, #tpu.memory_space<smem>>
      %c0_i32_12 = arith.constant 0 : i32
      %19 = tpu.memref_slice %arg4[%16, %c0_i32_12] : memref<7x1024xi32, #tpu.memory_space<any>> -> memref<1x1024xi32, #tpu.memory_space<any>>
      %20 = tpu.memref_squeeze %19 : memref<1x1024xi32, #tpu.memory_space<any>> -> memref<1024xi32, #tpu.memory_space<any>>
      %c0_i32_13 = arith.constant 0 : i32
      %21 = tpu.memref_slice %arg5[%18, %c0_i32_13] : memref<16x1024xi32, #tpu.memory_space<any>> -> memref<1x1024xi32, #tpu.memory_space<any>>
      %22 = tpu.memref_squeeze %21 : memref<1x1024xi32, #tpu.memory_space<any>> -> memref<1024xi32, #tpu.memory_space<any>>
      %23 = tpu.memref_slice %arg6[%11] : memref<8x!tpu.dma_semaphore, #tpu.memory_space<semaphore_mem>> -> memref<1x!tpu.dma_semaphore, #tpu.memory_space<semaphore_mem>>
      %24 = tpu.memref_squeeze %23 : memref<1x!tpu.dma_semaphore, #tpu.memory_space<semaphore_mem>> -> memref<!tpu.dma_semaphore, #tpu.memory_space<semaphore_mem>>
      tpu.enqueue_dma source(%20 : memref<1024xi32, #tpu.memory_space<any>>) target(%22 : memref<1024xi32, #tpu.memory_space<any>>) target_semaphore(%24 : memref<!tpu.dma_semaphore, #tpu.memory_space<semaphore_mem>>)
    }
    %c7_i32_0 = arith.constant 7 : i32
    %c0_i32_1 = arith.constant 0 : i32
    %c7_i32_2 = arith.constant 7 : i32
    %1 = arith.addi %c0_i32_1, %c7_i32_2 : i32
    %c1_i32_3 = arith.constant 1 : i32
    scf.for %arg7 = %c0_i32_1 to %1 step %c1_i32_3  : i32 {
      %c8_i32 = arith.constant 8 : i32
      %c0_i32_5 = arith.constant 0 : i32
      %2 = arith.cmpi eq, %c8_i32, %c0_i32_5 : i32
      %c1_i32_6 = arith.constant 1 : i32
      %3 = arith.select %2, %c1_i32_6, %c8_i32 : i32
      %4 = arith.remsi %arg7, %3 : i32
      %c0_i32_7 = arith.constant 0 : i32
      %5 = arith.cmpi ne, %4, %c0_i32_7 : i32
      %c0_i32_8 = arith.constant 0 : i32
      %6 = arith.cmpi slt, %4, %c0_i32_8 : i32
      %c0_i32_9 = arith.constant 0 : i32
      %7 = arith.cmpi slt, %3, %c0_i32_9 : i32
      %8 = arith.xori %6, %7 : i1
      %9 = arith.andi %8, %5 : i1
      %10 = arith.addi %4, %3 : i32
      %11 = arith.select %9, %10, %4 : i32
      %12 = arith.index_cast %arg7 : i32 to index
      %13 = memref.load %arg2[%12] : memref<7xi32, #tpu.memory_space<smem>>
      %14 = arith.index_cast %arg7 : i32 to index
      %15 = memref.load %arg1[%14] : memref<7xi32, #tpu.memory_space<smem>>
      %c0_i32_10 = arith.constant 0 : i32
      %16 = tpu.memref_slice %arg4[%13, %c0_i32_10] : memref<7x1024xi32, #tpu.memory_space<any>> -> memref<1x1024xi32, #tpu.memory_space<any>>
      %17 = tpu.memref_squeeze %16 : memref<1x1024xi32, #tpu.memory_space<any>> -> memref<1024xi32, #tpu.memory_space<any>>
      %c0_i32_11 = arith.constant 0 : i32
      %18 = tpu.memref_slice %arg5[%15, %c0_i32_11] : memref<16x1024xi32, #tpu.memory_space<any>> -> memref<1x1024xi32, #tpu.memory_space<any>>
      %19 = tpu.memref_squeeze %18 : memref<1x1024xi32, #tpu.memory_space<any>> -> memref<1024xi32, #tpu.memory_space<any>>
      %20 = tpu.memref_slice %arg6[%11] : memref<8x!tpu.dma_semaphore, #tpu.memory_space<semaphore_mem>> -> memref<1x!tpu.dma_semaphore, #tpu.memory_space<semaphore_mem>>
      %21 = tpu.memref_squeeze %20 : memref<1x!tpu.dma_semaphore, #tpu.memory_space<semaphore_mem>> -> memref<!tpu.dma_semaphore, #tpu.memory_space<semaphore_mem>>
      tpu.wait_dma2 semaphore(%21 : memref<!tpu.dma_semaphore, #tpu.memory_space<semaphore_mem>>) src(%17 : memref<1024xi32, #tpu.memory_space<any>>) dst(%19 : memref<1024xi32, #tpu.memory_space<any>>)
    }
    %c7_i32_4 = arith.constant 7 : i32
    return
  }
}

</mosaic_0001>

<bundles_post_ra>
// kernel: index_put_3d.1
= control target key start
LH: loop header
LB: loop body
LE: loop exit
PB: predicated region body
PF: predicated region fallthrough
CT: control target
= control target key end

     0   :  { %s396_s0 = inlined_call_operand.vmem [shape: s32[7], index: 0, kind: input, shape index: {}]   ;;  %s397_s2 = inlined_call_operand.vmem [shape: s32[16,1024], index: 2, kind: input, shape index: {}, may-alias: {2,4}]   ;;  %s398_s3 = inlined_call_operand.vmem [shape: s32[7,1024], index: 3, kind: input, shape index: {}]   ;;  %s399_s4 = inlined_call_operand.vmem [shape: s32[16,1024], index: 4, kind: output, shape index: {}, may-alias: {2,4}]   ;;  %s400_s1 = inlined_call_operand.vmem [shape: s32[7], index: 1, kind: input, shape index: {}]  }
   0x1   :  { %s9_s17 = sshll.u32 %s396_s0, 4  ;;  %s13_s20 = sshll.u32 %s400_s1, 4  ;;  %s10_s17 = int_to_ptr.vmem [resolvable:$true] %s9_s17  ;;  %s14_s20 = int_to_ptr.vmem [resolvable:$true] %s13_s20 }
   0x2   :  { %s290_s2 = scalar_lea.vmem %s10_s17, 16  ;;  %p295_p1 = scmp.lt.s32.totalorder %s10_s17, %s10_s17 }
   0x3   :  { %p291_p0 = scmp.ne.s32.totalorder %s10_s17, %s290_s2  ;;  %p296_p2 = scmp.lt.s32.totalorder %s290_s2, %s290_s2 }
   0x5   :  { %p297_p3 = por %p296_p2, %p295_p1 }
   0x7   :  { %p298_p4 = pnand %p297_p3, %p291_p0 }
   0x9   :  { %301 = shalt.err (!%p298_p4)  }
   0xa   :  { %s338_s21 = smov [#allocation4]   ;;  %s302_s22 = scalar_lea.vmem %s14_s20, 16 }
   0xb   :  { %12 = dma.vmem_to_smem %s10_s17, 16, %s338_s21, [#allocation3] }
   0xc   :  { %p303_p5 = scmp.ne.s32.totalorder %s14_s20, %s302_s22  ;;  %p307_p6 = scmp.lt.s32.totalorder %s14_s20, %s14_s20 }
   0xd   :  { %p308_p7 = scmp.lt.s32.totalorder %s302_s22, %s302_s22 }
   0xf   :  { %p309_p8 = por %p308_p7, %p307_p6 }
  0x11   :  { %p310_p9 = pnand %p309_p8, %p303_p5 }
  0x13   :  { %313 = shalt.err (!%p310_p9)  }
  0x14   :  { %s339_s0 = smov [#allocation5]  }
  0x15   :  { %16 = dma.vmem_to_smem %s14_s20, 16, %s339_s0, [#allocation3] }
  0x16   :  { %322 = dma.done.wait [#allocation3], 32 }
  0x17   :  { %323 = vsyncadd [#allocation3], 4294967264 }
  0x18   :  { %18 = sfence }
  0x19   :  { %s371_s1 = smov 0  }
  0x1a LB: > { %p25_p10 = scmp.lt.s32.totalorder %s332_s1, 0  ;;  %s26_s23 = ssub.s32 0, %s332_s1  ;;  %s332_s1 = sphi %s371_s1, %s24_s1  }
  0x1b   : > { %s252_s24 = smin.u32 %s332_s1, %s26_s23  ;;  %p271_p11 = scmp.ge.s32.totalorder %s332_s1, 8 }
  0x1c   : > { %s28_s25 = sand.u32 7, %s252_s24  }
  0x1d   : > { %s29_s26 = ssub.s32 0, %s28_s25 }
  0x1e   : > { %s402_s26 = smov (!%p25_p10, %s29_s26), %s28_s25 }
  0x1f   : > { %p254_p12 = scmp.lt.s32.totalorder %s402_s26, 0  ;;  %s35_s27 = sadd.s32 8, %s402_s26 }
  0x21   : > { %s404_s27 = smov (!%p254_p12, %s35_s27), %s402_s26 }
  0x22   : > { %s380_s28 = scalar_lea.sflag [#allocation2], %s404_s27 }
  0x23   : > { %325 = dma.done.wait (%p271_p11), %s380_s28, 128 }
  0x24   : > { %327 = vsyncadd (%p271_p11), %s380_s28, 4294967168  ;;  %s46_s29 = sld [smem:[#allocation5 + %s332_s1]] }
  0x25   : > { %s47_s30 = sld [smem:[#allocation4 + %s332_s1]] }
  0x2a   : > { %s48_s5 = sshrl.u32 %s46_s29, 3  ;;  %s49_s6 = sand.u32 7, %s46_s29  }
  0x2b   : > { %s256_s7 = sshll.u32 %s48_s5, 6  ;;  %s53_s8 = sshrl.u32 %s47_s30, 3 }
  0x2c   : > { %s51_s9 = sadd.s32 %s256_s7, %s49_s6  ;;  %s54_s10 = sand.u32 7, %s47_s30  }
  0x2d   : > { %s52_s13 = scalar_lea.vmem %s398_s3, %s51_s9  ;;  %s257_s14 = sshll.u32 %s53_s8, 6 }
  0x2e   : > { %s56_s15 = sadd.s32 %s257_s14, %s54_s10  ;;  %v77_v0 = vld [vmem:[%s52_s13] sm:$0x1]  ;;  %v79_v1 = vld [vmem:[%s52_s13 + $0x8] sm:$0x1]  ;;  %v81_v2 = vld [vmem:[%s52_s13 + $0x10] sm:$0x1] }
  0x2f   : > { %s57_s18 = scalar_lea.vmem %s399_s4, %s56_s15  ;;  %v83_v3 = vld [vmem:[%s52_s13 + $0x18] sm:$0x1]  ;;  %v85_v4 = vld [vmem:[%s52_s13 + $0x20] sm:$0x1]  ;;  %v87_v5 = vld [vmem:[%s52_s13 + $0x28] sm:$0x1] }
  0x30   : > { %78 = vst [vmem:[%s57_s18] sm:$0x1] %v77_v0  ;;  %80 = vst [vmem:[%s57_s18 + $0x8] sm:$0x1] %v79_v1  ;;  %v89_v6 = vld [vmem:[%s52_s13 + $0x30] sm:$0x1] }
  0x31   : > { %82 = vst [vmem:[%s57_s18 + $0x10] sm:$0x1] %v81_v2  ;;  %84 = vst [vmem:[%s57_s18 + $0x18] sm:$0x1] %v83_v3  ;;  %v91_v7 = vld [vmem:[%s52_s13 + $0x38] sm:$0x1] }
  0x32   : > { %86 = vst [vmem:[%s57_s18 + $0x20] sm:$0x1] %v85_v4  ;;  %88 = vst [vmem:[%s57_s18 + $0x28] sm:$0x1] %v87_v5 }
  0x33   : > { %90 = vst [vmem:[%s57_s18 + $0x30] sm:$0x1] %v89_v6  ;;  %92 = vst [vmem:[%s57_s18 + $0x38] sm:$0x1] %v91_v7 }
  0x34   : > { %140 = vsyncadd %s380_s28, 128  ;;  %s24_s1 = sadd.s32 1, %s332_s1  }
  0x35   : > { %p21_p13 = scmp.ge.s32.totalorder %s24_s1, 7  }
  0x36   :  { %s334_s19 = smov (%p21_p13), 0  }
  0x37   :  { %23 = sbr.rel (!%p21_p13) target bundleno = 26 (0x1a), region = 93 }
  0x3c LB: > { %p147_p0 = scmp.lt.s32.totalorder %s336_s19, 0  ;;  %s148_s20 = ssub.s32 0, %s336_s19  ;;  %s336_s19 = sphi %s334_s19, %s146_s19  }
  0x3d   : > { %s258_s2 = smin.u32 %s336_s19, %s148_s20 }
  0x3e   : > { %s150_s21 = sand.u32 7, %s258_s2  }
  0x3f   : > { %s151_s22 = ssub.s32 0, %s150_s21 }
  0x40   : > { %s406_s22 = smov (!%p147_p0, %s151_s22), %s150_s21 }
  0x41   : > { %p260_p1 = scmp.lt.s32.totalorder %s406_s22, 0  ;;  %s157_s0 = sadd.s32 8, %s406_s22 }
  0x43   : > { %s408_s0 = smov (!%p260_p1, %s157_s0), %s406_s22 }
  0x44   : > { %s161_s23 = scalar_lea.sflag [#allocation2], %s408_s0 }
  0x45   : > { %328 = dma.done.wait %s161_s23, 128 }
  0x46   : > { %329 = vsyncadd %s161_s23, 4294967168  ;;  %s146_s19 = sadd.s32 1, %s336_s19  }
  0x47   : > { %p143_p2 = scmp.ge.s32.totalorder %s146_s19, 7  }
  0x49   :  { %145 = sbr.rel (!%p143_p2) target bundleno = 60 (0x3c), region = 104 }
  0x4e   :  { %164 = vsyncmov [#allocation2] }
  0x51   :  { %s165_s3 = vpop.sfrf %164 }
  0x52   :  { %p261_p3 = scmp.ne.s32.totalorder %s165_s3, 0 }
  0x54   :  { %169 = shalt.err (%p261_p3)  }
  0x55   :  { %171 = vsyncmov [#allocation2 + $0x1] }
  0x58   :  { %s172_s4 = vpop.sfrf %171 }
  0x59   :  { %p262_p4 = scmp.ne.s32.totalorder %s172_s4, 0 }
  0x5b   :  { %176 = shalt.err (%p262_p4)  }
  0x5c   :  { %178 = vsyncmov [#allocation2 + $0x2] }
  0x5f   :  { %s179_s1 = vpop.sfrf %178 }
  0x60   :  { %p263_p5 = scmp.ne.s32.totalorder %s179_s1, 0 }
  0x62   :  { %183 = shalt.err (%p263_p5)  }
  0x63   :  { %185 = vsyncmov [#allocation2 + $0x3] }
  0x66   :  { %s186_s24 = vpop.sfrf %185 }
  0x67   :  { %p264_p6 = scmp.ne.s32.totalorder %s186_s24, 0 }
  0x69   :  { %190 = shalt.err (%p264_p6)  }
  0x6a   :  { %192 = vsyncmov [#allocation2 + $0x4] }
  0x6d   :  { %s193_s25 = vpop.sfrf %192 }
  0x6e   :  { %p265_p7 = scmp.ne.s32.totalorder %s193_s25, 0 }
  0x70   :  { %197 = shalt.err (%p265_p7)  }
  0x71   :  { %199 = vsyncmov [#allocation2 + $0x5] }
  0x74   :  { %s200_s26 = vpop.sfrf %199 }
  0x75   :  { %p266_p8 = scmp.ne.s32.totalorder %s200_s26, 0 }
  0x77   :  { %204 = shalt.err (%p266_p8)  }
  0x78   :  { %206 = vsyncmov [#allocation2 + $0x6] }
  0x7b   :  { %s207_s27 = vpop.sfrf %206 }
  0x7c   :  { %p267_p9 = scmp.ne.s32.totalorder %s207_s27, 0 }
  0x7e   :  { %211 = shalt.err (%p267_p9)  }
  0x7f   :  { %213 = vsyncmov [#allocation2 + $0x7] }
  0x82   :  { %s214_s28 = vpop.sfrf %213 }
  0x83   :  { %p268_p10 = scmp.ne.s32.totalorder %s214_s28, 0 }
  0x85   :  { %218 = shalt.err (%p268_p10)  }

</bundles_post_ra>
